<compile_context>
chip_gen: v5e
topology: v5e:2x2
jax: 0.10.0
libtpu: 0.0.40
codegen_flags: <defaults>
</compile_context>

<pallas_src>
import jax
import jax.numpy as jnp
import numpy as np
from jax.experimental import pallas as pl
from jax.experimental.pallas import tpu as pltpu  # noqa: F401  (TPU backend; CompilerParams at real shapes)

# ---- small synthetic shapes consistent with the module's forward -------------
B = 2
C_RGB, C_ALPHA = 3, 1
C_IN = C_RGB + C_ALPHA                # RGBA, matching AlphaCLIP's alpha-mask channel
H = W = 16
PATCH = 8
NP_H, NP_W = H // PATCH, W // PATCH
N_PATCH = NP_H * NP_W                 # 4 patch tokens
P_RGB = C_RGB * PATCH * PATCH         # 192
P_ALPHA = C_ALPHA * PATCH * PATCH     # 64
P_TOTAL = P_RGB + P_ALPHA             # 256
D_VIS = 32                            # (synthetic, small) vision width
D_EMB = 32                            # joint image/text embedding dim
N_TEXT = 1                            # AlphaClipClassifier asserts exactly one label
N_TEXT_PAD = 128                      # pad text axis -> lane-dense (unmasked) output store
K_IMG = C_IN * H * W                  # 1024 flattened NCHW features = 8 full lane granules
WB_ROWS = K_IMG + 8                   # W_img rows + bias row + sublane padding (multiple of 8)


def _alpha_clip_kernel(x_ref, wb_ref, text_t_ref, out_ref):
    """x_ref:      [B, K_IMG]           flattened NCHW RGBA image (free bitcast reshape)
       wb_ref:     [WB_ROWS, D_EMB]     rows [0,K_IMG) = W_img (patchify+mean-pool+embed+proj
                                        folded offline, 1/N_PATCH included); row K_IMG = b@w_proj
       text_t_ref: [D_EMB, N_TEXT_PAD]  logit_scale * L2-normalized text, transposed, zero-padded
       out_ref:    [B, N_TEXT_PAD]      logits (wrapper slices to [B, N_TEXT])"""
    w_img = wb_ref[:K_IMG, :]                       # static ref view -> [K_IMG, D_EMB]
    b_fold = wb_ref[K_IMG:K_IMG + 1, :]             # static ref view -> [1, D_EMB]
    # Single fused MXU matmul: image -> joint embedding (vision encoder stand-in, folded).
    feat = jnp.dot(x_ref[...], w_img, preferred_element_type=jnp.float32) + b_fold  # [B, D_EMB]
    feat = feat * jax.lax.rsqrt(jnp.sum(feat * feat, axis=-1, keepdims=True) + 1e-12)
    # outputs = logit_scale * image_features @ text_features.T  (softmax=False); the scale and
    # the transpose were folded into text_t offline, so this is one lane-dense MXU dot + store.
    out_ref[...] = jnp.dot(feat, text_t_ref[...], preferred_element_type=jnp.float32)


def prepare_inference_params(params):
    """Image-independent preprocessing, done once (offline / at model build)."""
    # Fuse RGB|alpha patch embeddings and fold the joint projection:  [256, D_EMB]
    w_patch = jnp.concatenate([params['w_rgb'], params['w_alpha']], axis=0)
    w_fold = w_patch @ params['w_proj']
    # Fold patchify + mean-pool: pooled = mean_n patchify(x)[:, n, :] is linear in the flattened
    # NCHW image, so tile w_fold over the 2x2 patch grid and absorb the 1/N_PATCH:
    #   W_img[c*H*W + h*W + w, :] == w_fold[c*P^2 + (h%P)*P + (w%P), :] / N_PATCH
    wf = w_fold.reshape(C_IN, PATCH, PATCH, D_EMB)
    w_img = jnp.broadcast_to(wf[:, None, :, None, :, :],
                             (C_IN, NP_H, PATCH, NP_W, PATCH, D_EMB))
    w_img = (w_img / N_PATCH).reshape(K_IMG, D_EMB).astype(jnp.float32)
    b_fold = (params['b'] @ params['w_proj']).astype(jnp.float32)          # [1, D_EMB]
    # Pack weight + bias into one contiguous buffer -> one DMA, static in-kernel slices.
    wb = jnp.zeros((WB_ROWS, D_EMB), jnp.float32)
    wb = wb.at[:K_IMG].set(w_img).at[K_IMG].set(b_fold[0])
    # Text: L2-normalize once, fold the CLIP logit scale, transpose to lane-dense [D_EMB, 128].
    txt = params['text']
    txt = txt * jax.lax.rsqrt(jnp.sum(txt * txt, axis=-1, keepdims=True) + 1e-12)
    txt = params['scale'][0, 0] * txt                                       # [N_TEXT, D_EMB]
    text_t = jnp.zeros((D_EMB, N_TEXT_PAD), jnp.float32).at[:, :N_TEXT].set(txt.T)
    return {'wb': wb, 'text_t': text_t}


@jax.jit
def alpha_clip_logits(image, wb, text_t):
    # Contiguous NCHW flatten -> bitcast under jit: no im2col, no HBM roundtrip, one dispatch.
    x_flat = image.reshape(B, K_IMG).astype(jnp.float32)
    out = pl.pallas_call(
        _alpha_clip_kernel,
        out_shape=jax.ShapeDtypeStruct((B, N_TEXT_PAD), jnp.float32),
        # grid-free call: every operand is a full-array VMEM block; no grid -> no pipeline
        # prologue/epilogue or double-buffer bookkeeping for this single-invocation kernel.
    )(x_flat, wb, text_t)
    return out[:, :N_TEXT]                                                   # [B, N_TEXT]


# ---- pure-JAX reference (unfused / unfolded) to validate the algebraic rewrites -------------
def _patchify_ref(x):
    # NCHW -> [B, N_PATCH, C*PATCH*PATCH]  (im2col for a stride=PATCH conv), reference only.
    b, c = x.shape[0], x.shape[1]
    x = x.reshape(b, c, NP_H, PATCH, NP_W, PATCH)
    x = x.transpose(0, 2, 4, 1, 3, 5)
    return x.reshape(b, NP_H * NP_W, c * PATCH * PATCH).astype(jnp.float32)


def reference_logits(image, params):
    prgb = _patchify_ref(image[:, :C_RGB])
    palpha = _patchify_ref(image[:, C_RGB:])
    tok = (jnp.einsum('bnp,pd->bnd', prgb, params['w_rgb'])
           + jnp.einsum('bnp,pd->bnd', palpha, params['w_alpha'])
           + params['b'])
    pooled = jnp.mean(tok, axis=1)
    feat = pooled @ params['w_proj']
    feat = feat / jnp.sqrt(jnp.sum(feat * feat, axis=-1, keepdims=True) + 1e-12)
    txt = params['text']
    txt = txt / jnp.sqrt(jnp.sum(txt * txt, axis=-1, keepdims=True) + 1e-12)
    return params['scale'][0, 0] * (feat @ txt.T)


def init_params(key):
    k1, k2, k3, k4, k5 = jax.random.split(key, 5)
    return {
        'w_rgb':   0.02 * jax.random.normal(k1, (P_RGB, D_VIS), jnp.float32),
        'w_alpha': 0.02 * jax.random.normal(k2, (P_ALPHA, D_VIS), jnp.float32),
        'b':       0.01 * jax.random.normal(k3, (1, D_VIS), jnp.float32),
        'w_proj':  0.02 * jax.random.normal(k4, (D_VIS, D_EMB), jnp.float32),
        'text':    jax.random.normal(k5, (N_TEXT, D_EMB), jnp.float32),
        'scale':   jnp.full((1, 1), float(1.0 / 0.07), jnp.float32),  # CLIP logit scale
    }


if __name__ == "__main__":
    key = jax.random.PRNGKey(0)
    k_img, k_par = jax.random.split(key)
    candidate_labels = ["a photo of a cat"]   # exactly one, as the module asserts
    image = jax.random.normal(k_img, (B, C_IN, H, W), jnp.float32)
    params = init_params(k_par)
    inf_params = prepare_inference_params(params)   # one-time, image-independent

    logits = alpha_clip_logits(image, inf_params['wb'], inf_params['text_t'])
    logits = jax.block_until_ready(logits)

    ref = reference_logits(image, params)
    np.testing.assert_allclose(np.asarray(logits), np.asarray(ref),
                               rtol=2e-4, atol=1e-4)

    # Reproduce the module's output structure: list (per input) of
    # [{'score': ..., 'label': ...}] dicts; collapse if a single input.
    assert logits.ndim == 2, 'AlphaCLIP outputs must be a 2D tensor'
    res = []
    for input_i in range(logits.shape[0]):
        res.append([{'score': logits[input_i, text_i],
                     'label': candidate_labels[text_i]}
                    for text_i in range(logits.shape[1])])
    if len(res) == 1:
        res = res[0]

    print("KERNEL_OK")
</pallas_src>

<mosaic_0001>
module attributes {stable_mosaic.version = 11 : i64} {
  func.func @_alpha_clip_kernel(%arg0: memref<2x1024xf32, #tpu.memory_space<vmem>>, %arg1: memref<1032x32xf32, #tpu.memory_space<vmem>>, %arg2: memref<32x128xf32, #tpu.memory_space<vmem>>, %arg3: memref<2x128xf32, #tpu.memory_space<vmem>>) attributes {dimension_semantics = [], scalar_prefetch = 0 : i64, scratch_operands = 0 : i64, tpu.core_type = #tpu.core_type<tc>} {
    %c0 = arith.constant 0 : index
    %c0_0 = arith.constant 0 : index
    %0 = vector.load %arg1[%c0, %c0_0] : memref<1032x32xf32, #tpu.memory_space<vmem>>, vector<1024x32xf32>
    %c1024 = arith.constant 1024 : index
    %c0_1 = arith.constant 0 : index
    %1 = vector.load %arg1[%c1024, %c0_1] : memref<1032x32xf32, #tpu.memory_space<vmem>>, vector<1x32xf32>
    %c0_2 = arith.constant 0 : index
    %c0_3 = arith.constant 0 : index
    %2 = vector.load %arg0[%c0_2, %c0_3] : memref<2x1024xf32, #tpu.memory_space<vmem>>, vector<2x1024xf32>
    %cst = arith.constant dense<0.000000e+00> : vector<2x32xf32>
    %3 = tpu.matmul %2, %0, %cst {dimension_numbers = #tpu.dot_dimension_numbers<[1], [0], [0], [1], [0, 0, 1, 1], [], []>} : vector<2x1024xf32>, vector<1024x32xf32>, vector<2x32xf32> -> vector<2x32xf32>
    %4 = vector.broadcast %1 : vector<1x32xf32> to vector<2x32xf32>
    %5 = arith.addf %3, %4 : vector<2x32xf32>
    %6 = arith.mulf %5, %5 : vector<2x32xf32>
    %cst_4 = arith.constant dense<0.000000e+00> : vector<2xf32>
    %7 = vector.multi_reduction <add>, %6, %cst_4 [1] : vector<2x32xf32> to vector<2xf32>
    %8 = vector.shape_cast %7 : vector<2xf32> to vector<2x1xf32>
    %cst_5 = arith.constant 9.99999996E-13 : f32
    %9 = vector.broadcast %cst_5 : f32 to vector<2x1xf32>
    %10 = arith.addf %8, %9 : vector<2x1xf32>
    %11 = math.rsqrt %10 : vector<2x1xf32>
    %12 = vector.broadcast %11 : vector<2x1xf32> to vector<2x32xf32>
    %13 = arith.mulf %5, %12 : vector<2x32xf32>
    %c0_6 = arith.constant 0 : index
    %c0_7 = arith.constant 0 : index
    %14 = vector.load %arg2[%c0_6, %c0_7] : memref<32x128xf32, #tpu.memory_space<vmem>>, vector<32x128xf32>
    %cst_8 = arith.constant dense<0.000000e+00> : vector<2x128xf32>
    %15 = tpu.matmul %13, %14, %cst_8 {dimension_numbers = #tpu.dot_dimension_numbers<[1], [0], [0], [1], [0, 0, 1, 1], [], []>} : vector<2x32xf32>, vector<32x128xf32>, vector<2x128xf32> -> vector<2x128xf32>
    %c0_9 = arith.constant 0 : index
    %c0_10 = arith.constant 0 : index
    %16 = vector.load %arg3[%c0_9, %c0_10] : memref<2x128xf32, #tpu.memory_space<vmem>>, vector<2x128xf32>
    tpu.vector_store %arg3[%c0_9, %c0_10], %15 {strides = array<i32>} : memref<2x128xf32, #tpu.memory_space<vmem>>, vector<2x128xf32>,
    return
  }
}

</mosaic_0001>

<bundles_post_ra>
// kernel: alpha_clip_logits.1
= control target key start
LH: loop header
LB: loop body
LE: loop exit
PB: predicated region body
PF: predicated region fallthrough
CT: control target
= control target key end

     0   :  { %vm328_vm0 = vcmask 254976   ;;  %vm348_vm4 = vcmask 261120   ;;  %s809_s1 = inlined_call_operand.vmem [shape: f32[1032,32], index: 1, kind: input, shape index: {}]   ;;  %s810_s0 = inlined_call_operand.vmem [shape: f32[2,1024], index: 0, kind: input, shape index: {}]   ;;  %s811_s2 = inlined_call_operand.vmem [shape: f32[32,128], index: 2, kind: input, shape index: {}]   ;;  %s812_s3 = inlined_call_operand.vmem [shape: f32[2,128], index: 3, kind: output, shape index: {}]  }
   0x1   :  { %v61_v0 = vld [vmem:[%s809_s1 + $0x178] sm:$0xff]  ;;  %v60_v2 = vld [vmem:[%s809_s1 + $0x170] sm:$0xff]  ;;  %v59_v6 = vld [vmem:[%s809_s1 + $0x168] sm:$0xff] }
   0x2   :  { %v29_v1 = vld [vmem:[%s809_s1 + $0x78] sm:$0xff]  ;;  %207 = vmatpush.msra.mxu2 %v61_v0  ;;  %v28_v4 = vld [vmem:[%s809_s1 + $0x70] sm:$0xff]  ;;  %v27_v8 = vld [vmem:[%s809_s1 + $0x68] sm:$0xff] }
   0x3   :  { %167 = vmatpush.msra.mxu0 %v29_v1  ;;  %v77_v3 = vld [vmem:[%s809_s1 + $0x1f8] sm:$0xff]  ;;  %v76_v7 = vld [vmem:[%s809_s1 + $0x1f0] sm:$0xff]  ;;  %v75_v10 = vld [vmem:[%s809_s1 + $0x1e8] sm:$0xff] }
   0x4   :  { %v45_v5 = vld [vmem:[%s809_s1 + $0xf8] sm:$0xff]  ;;  %227 = vmatpush.msra.mxu3 %v77_v3  ;;  %208 = vmatpush.msra.mxu2 %v60_v2  ;;  %v44_v9 = vld [vmem:[%s809_s1 + $0xf0] sm:$0xff]  ;;  %v58_v11 = vld [vmem:[%s809_s1 + $0x160] sm:$0xff] }
   0x5   :  { %187 = vmatpush.msra.mxu1 %v45_v5  ;;  %168 = vmatpush.msra.mxu0 %v28_v4  ;;  %v26_v12 = vld [vmem:[%s809_s1 + $0x60] sm:$0xff]  ;;  %v43_v13 = vld [vmem:[%s809_s1 + $0xe8] sm:$0xff]  ;;  %v57_v16 = vld [vmem:[%s809_s1 + $0x158] sm:$0xff] }
   0x6   :  { %228 = vmatpush.msra.mxu3 %v76_v7  ;;  %209 = vmatpush.msra.mxu2 %v59_v6  ;;  %v74_v14 = vld [vmem:[%s809_s1 + $0x1e0] sm:$0xff]  ;;  %v25_v17 = vld [vmem:[%s809_s1 + $0x58] sm:$0xff]  ;;  %v56_v20 = vld [vmem:[%s809_s1 + $0x150] sm:$0xff] }
   0x7   :  { %188 = vmatpush.msra.mxu1 %v44_v9  ;;  %169 = vmatpush.msra.mxu0 %v27_v8  ;;  %v42_v15 = vld [vmem:[%s809_s1 + $0xe0] sm:$0xff]  ;;  %v73_v18 = vld [vmem:[%s809_s1 + $0x1d8] sm:$0xff]  ;;  %v24_v21 = vld [vmem:[%s809_s1 + $0x50] sm:$0xff] }
   0x8   :  { %229 = vmatpush.msra.mxu3 %v75_v10  ;;  %210 = vmatpush.msra.mxu2 %v58_v11  ;;  %v41_v19 = vld [vmem:[%s809_s1 + $0xd8] sm:$0xff]  ;;  %v72_v22 = vld [vmem:[%s809_s1 + $0x1d0] sm:$0xff]  ;;  %v55_v24 = vld [vmem:[%s809_s1 + $0x148] sm:$0xff] }
   0x9   :  { %189 = vmatpush.msra.mxu1 %v43_v13  ;;  %170 = vmatpush.msra.mxu0 %v26_v12  ;;  %v40_v23 = vld [vmem:[%s809_s1 + $0xd0] sm:$0xff]  ;;  %v23_v25 = vld [vmem:[%s809_s1 + $0x48] sm:$0xff]  ;;  %v54_v28 = vld [vmem:[%s809_s1 + $0x140] sm:$0xff] }
   0xa   :  { %230 = vmatpush.msra.mxu3 %v74_v14  ;;  %211 = vmatpush.msra.mxu2 %v57_v16  ;;  %v71_v26 = vld [vmem:[%s809_s1 + $0x1c8] sm:$0xff]  ;;  %v22_v29 = vld [vmem:[%s809_s1 + $0x40] sm:$0xff]  ;;  %v53_v32 = vld [vmem:[%s809_s1 + $0x138] sm:$0xff] }
   0xb   :  { %190 = vmatpush.msra.mxu1 %v42_v15  ;;  %171 = vmatpush.msra.mxu0 %v25_v17  ;;  %v39_v27 = vld [vmem:[%s809_s1 + $0xc8] sm:$0xff]  ;;  %v70_v30 = vld [vmem:[%s809_s1 + $0x1c0] sm:$0xff]  ;;  %v21_v33 = vld [vmem:[%s809_s1 + $0x38] sm:$0xff] }
   0xc   :  { %231 = vmatpush.msra.mxu3 %v73_v18  ;;  %212 = vmatpush.msra.mxu2 %v56_v20  ;;  %v38_v31 = vld [vmem:[%s809_s1 + $0xc0] sm:$0xff]  ;;  %v69_v34 = vld [vmem:[%s809_s1 + $0x1b8] sm:$0xff]  ;;  %v52_v36 = vld [vmem:[%s809_s1 + $0x130] sm:$0xff] }
   0xd   :  { %191 = vmatpush.msra.mxu1 %v41_v19  ;;  %172 = vmatpush.msra.mxu0 %v24_v21  ;;  %v37_v35 = vld [vmem:[%s809_s1 + $0xb8] sm:$0xff]  ;;  %v20_v37 = vld [vmem:[%s809_s1 + $0x30] sm:$0xff]  ;;  %v51_v40 = vld [vmem:[%s809_s1 + $0x128] sm:$0xff] }
   0xe   :  { %232 = vmatpush.msra.mxu3 %v72_v22  ;;  %213 = vmatpush.msra.mxu2 %v55_v24  ;;  %v68_v38 = vld [vmem:[%s809_s1 + $0x1b0] sm:$0xff]  ;;  %v19_v41 = vld [vmem:[%s809_s1 + $0x28] sm:$0xff]  ;;  %v50_v44 = vld [vmem:[%s809_s1 + $0x120] sm:$0xff] }
   0xf   :  { %192 = vmatpush.msra.mxu1 %v40_v23  ;;  %173 = vmatpush.msra.mxu0 %v23_v25  ;;  %v36_v39 = vld [vmem:[%s809_s1 + $0xb0] sm:$0xff]  ;;  %v67_v42 = vld [vmem:[%s809_s1 + $0x1a8] sm:$0xff]  ;;  %v18_v45 = vld [vmem:[%s809_s1 + $0x20] sm:$0xff] }
  0x10   :  { %233 = vmatpush.msra.mxu3 %v71_v26  ;;  %214 = vmatpush.msra.mxu2 %v54_v28  ;;  %v35_v43 = vld [vmem:[%s809_s1 + $0xa8] sm:$0xff]  ;;  %v66_v46 = vld [vmem:[%s809_s1 + $0x1a0] sm:$0xff]  ;;  %v49_v48 = vld [vmem:[%s809_s1 + $0x118] sm:$0xff] }
  0x11   :  { %193 = vmatpush.msra.mxu1 %v39_v27  ;;  %174 = vmatpush.msra.mxu0 %v22_v29  ;;  %v34_v47 = vld [vmem:[%s809_s1 + $0xa0] sm:$0xff]  ;;  %v17_v49 = vld [vmem:[%s809_s1 + $0x18] sm:$0xff]  ;;  %v48_v52 = vld [vmem:[%s809_s1 + $0x110] sm:$0xff] }
  0x12   :  { %234 = vmatpush.msra.mxu3 %v70_v30  ;;  %215 = vmatpush.msra.mxu2 %v53_v32  ;;  %v65_v50 = vld [vmem:[%s809_s1 + $0x198] sm:$0xff]  ;;  %v16_v53 = vld [vmem:[%s809_s1 + $0x10] sm:$0xff]  ;;  %v47_v56 = vld [vmem:[%s809_s1 + $0x108] sm:$0xff] }
  0x13   :  { %194 = vmatpush.msra.mxu1 %v38_v31  ;;  %175 = vmatpush.msra.mxu0 %v21_v33  ;;  %v33_v51 = vld [vmem:[%s809_s1 + $0x98] sm:$0xff]  ;;  %v64_v54 = vld [vmem:[%s809_s1 + $0x190] sm:$0xff]  ;;  %v15_v57 = vld [vmem:[%s809_s1 + $0x8] sm:$0xff] }
  0x14   :  { %235 = vmatpush.msra.mxu3 %v69_v34  ;;  %216 = vmatpush.msra.mxu2 %v52_v36  ;;  %v32_v55 = vld [vmem:[%s809_s1 + $0x90] sm:$0xff]  ;;  %v63_v58 = vld [vmem:[%s809_s1 + $0x188] sm:$0xff]  ;;  %v46_v60 = vld [vmem:[%s809_s1 + $0x100] sm:$0xff] }
  0x15   :  { %195 = vmatpush.msra.mxu1 %v37_v35  ;;  %176 = vmatpush.msra.mxu0 %v20_v37  ;;  %v31_v59 = vld [vmem:[%s809_s1 + $0x88] sm:$0xff]  ;;  %v14_v61 = vld [vmem:[%s809_s1] sm:$0xff]  ;;  %v125_v62 = vld [vmem:[%s809_s1 + $0x378] sm:$0xff] }
  0x16   :  { %236 = vmatpush.msra.mxu3 %v68_v38  ;;  %217 = vmatpush.msra.mxu2 %v51_v40  ;;  %v62_v63 = vld [vmem:[%s809_s1 + $0x180] sm:$0xff]  ;;  %v93_v0 = vld [vmem:[%s809_s1 + $0x278] sm:$0xff]  ;;  %v124_v2 = vld [vmem:[%s809_s1 + $0x370] sm:$0xff] }
  0x17   :  { %196 = vmatpush.msra.mxu1 %v36_v39  ;;  %177 = vmatpush.msra.mxu0 %v19_v41  ;;  %v141_v1 = vld [vmem:[%s809_s1 + $0x3f8] sm:$0xff]  ;;  %v30_v3 = vld [vmem:[%s809_s1 + $0x80] sm:$0xff]  ;;  %v92_v4 = vld [vmem:[%s809_s1 + $0x270] sm:$0xff] }
  0x18   :  { %237 = vmatpush.msra.mxu3 %v67_v42  ;;  %218 = vmatpush.msra.mxu2 %v50_v44  ;;  %v109_v5 = vld [vmem:[%s809_s1 + $0x2f8] sm:$0xff]  ;;  %v123_v6 = vld [vmem:[%s809_s1 + $0x368] sm:$0xff]  ;;  %v140_v7 = vld [vmem:[%s809_s1 + $0x3f0] sm:$0xff] }
  0x19   :  { %197 = vmatpush.msra.mxu1 %v35_v43  ;;  %178 = vmatpush.msra.mxu0 %v18_v45  ;;  %v91_v8 = vld [vmem:[%s809_s1 + $0x268] sm:$0xff]  ;;  %v108_v9 = vld [vmem:[%s809_s1 + $0x2f0] sm:$0xff]  ;;  %v122_v10 = vld [vmem:[%s809_s1 + $0x360] sm:$0xff] }
  0x1a   :  { %238 = vmatpush.msra.mxu3 %v66_v46  ;;  %219 = vmatpush.msra.mxu2 %v49_v48  ;;  %v139_v11 = vld [vmem:[%s809_s1 + $0x3e8] sm:$0xff]  ;;  %v90_v12 = vld [vmem:[%s809_s1 + $0x260] sm:$0xff]  ;;  %v121_v15 = vld [vmem:[%s809_s1 + $0x358] sm:$0xff] }
  0x1b   :  { %198 = vmatpush.msra.mxu1 %v34_v47  ;;  %179 = vmatpush.msra.mxu0 %v17_v49  ;;  %v107_v13 = vld [vmem:[%s809_s1 + $0x2e8] sm:$0xff]  ;;  %v143_v14 = vld [vmem:[%s810_s0] sm:$0xff]  ;;  %v89_v17 = vld [vmem:[%s809_s1 + $0x258] sm:$0xff] }
  0x1c   :  { %239 = vmatpush.msra.mxu3 %v65_v50  ;;  %220 = vmatpush.msra.mxu2 %v48_v52  ;;  %v138_v16 = vld [vmem:[%s809_s1 + $0x3e0] sm:$0xff]  ;;  %148 = vst [vmem:[#allocation1] ss:$4 sm:$0xff] %v143_v14  ;;  %v120_v19 = vld [vmem:[%s809_s1 + $0x350] sm:$0xff]  ;;  %v137_v20 = vld [vmem:[%s809_s1 + $0x3d8] sm:$0xff] }
  0x1d   :  { %199 = vmatpush.msra.mxu1 %v33_v51  ;;  %180 = vmatpush.msra.mxu0 %v16_v53  ;;  %v106_v18 = vld [vmem:[%s809_s1 + $0x2e0] sm:$0xff]  ;;  %v88_v21 = vld [vmem:[%s809_s1 + $0x250] sm:$0xff]  ;;  %v105_v22 = vld [vmem:[%s809_s1 + $0x2d8] sm:$0xff] }
  0x1e   :  { %240 = vmatpush.msra.mxu3 %v64_v54  ;;  %221 = vmatpush.msra.mxu2 %v47_v56  ;;  %v119_v23 = vld [vmem:[%s809_s1 + $0x348] sm:$0xff]  ;;  %v136_v24 = vld [vmem:[%s809_s1 + $0x3d0] sm:$0xff]  ;;  %v118_v28 = vld [vmem:[%s809_s1 + $0x340] sm:$0xff] }
  0x1f   :  { %200 = vmatpush.msra.mxu1 %v32_v55  ;;  %181 = vmatpush.msra.mxu0 %v15_v57  ;;  %v144_v25 = vld [vmem:[%s810_s0 + $0x8] sm:$0xff]  ;;  %v104_v27 = vld [vmem:[%s809_s1 + $0x2d0] sm:$0xff]  ;;  %v86_v30 = vld [vmem:[%s809_s1 + $0x240] sm:$0xff] }
  0x20   :  { %241 = vmatpush.msra.mxu3 %v63_v58  ;;  %222 = vmatpush.msra.mxu2 %v46_v60  ;;  %v87_v26 = vld [vmem:[%s809_s1 + $0x248] sm:$0xff]  ;;  %150 = vst [vmem:[#allocation1 + $0x20] ss:$4 sm:$0xff] %v144_v25  ;;  %v117_v32 = vld [vmem:[%s809_s1 + $0x338] sm:$0xff]  ;;  %v134_v33 = vld [vmem:[%s809_s1 + $0x3c0] sm:$0xff] }
  0x21   :  { %201 = vmatpush.msra.mxu1 %v31_v59  ;;  %182 = vmatpush.msra.mxu0 %v14_v61  ;;  %v135_v29 = vld [vmem:[%s809_s1 + $0x3c8] sm:$0xff]  ;;  %v85_v34 = vld [vmem:[%s809_s1 + $0x238] sm:$0xff]  ;;  %v102_v35 = vld [vmem:[%s809_s1 + $0x2c0] sm:$0xff] }
  0x22   :  { %287 = vmatpush.msrb.mxu2 %v125_v62  ;;  %242 = vmatpush.msra.mxu3 %v62_v63  ;;  %v103_v31 = vld [vmem:[%s809_s1 + $0x2c8] sm:$0xff]  ;;  %v116_v36 = vld [vmem:[%s809_s1 + $0x330] sm:$0xff]  ;;  %v133_v37 = vld [vmem:[%s809_s1 + $0x3b8] sm:$0xff] }
  0x23   :  { %247 = vmatpush.msrb.mxu0 %v93_v0  ;;  %202 = vmatpush.msra.mxu1 %v30_v3  ;;  %v84_v38 = vld [vmem:[%s809_s1 + $0x230] sm:$0xff]  ;;  %v101_v39 = vld [vmem:[%s809_s1 + $0x2b8] sm:$0xff]  ;;  %v115_v40 = vld [vmem:[%s809_s1 + $0x328] sm:$0xff] }
  0x24   :  { %307 = vmatpush.msrb.mxu3 %v141_v1  ;;  %288 = vmatpush.msrb.mxu2 %v124_v2  ;;  %v132_v41 = vld [vmem:[%s809_s1 + $0x3b0] sm:$0xff]  ;;  %v83_v42 = vld [vmem:[%s809_s1 + $0x228] sm:$0xff]  ;;  %v114_v44 = vld [vmem:[%s809_s1 + $0x320] sm:$0xff] }
  0x25   :  { %248 = vmatpush.msrb.mxu0 %v92_v4  ;;  %267 = vmatpush.msrb.mxu1 %v109_v5  ;;  %v100_v43 = vld [vmem:[%s809_s1 + $0x2b0] sm:$0xff]  ;;  %v131_v45 = vld [vmem:[%s809_s1 + $0x3a8] sm:$0xff]  ;;  %v82_v47 = vld [vmem:[%s809_s1 + $0x220] sm:$0xff] }
  0x26   :  { %289 = vmatpush.msrb.mxu2 %v123_v6  ;;  %308 = vmatpush.msrb.mxu3 %v140_v7  ;;  %v153_v46 = vld.sshfl [vmem:[#allocation1 + $0x10] sm:$0xff pattern:$0x73625140]  ;;  %v99_v48 = vld [vmem:[%s809_s1 + $0x2a8] sm:$0xff]  ;;  %v113_v49 = vld [vmem:[%s809_s1 + $0x318] sm:$0xff] }
  0x27   :  { %249 = vmatpush.msrb.mxu0 %v91_v8  ;;  %268 = vmatpush.msrb.mxu1 %v108_v9  ;;  %v130_v50 = vld [vmem:[%s809_s1 + $0x3a0] sm:$0xff]  ;;  %v154_v52 = vld.sshfl [vmem:[#allocation1 + $0x18] sm:$0xff pattern:$0x73625140]  ;;  %v112_v55 = vld [vmem:[%s809_s1 + $0x310] sm:$0xff] }
  0x28   :  { %290 = vmatpush.msrb.mxu2 %v122_v10  ;;  %309 = vmatpush.msrb.mxu3 %v139_v11  ;;  %v151_v51 = vld.sshfl [vmem:[#allocation1] sm:$0xff pattern:$0x73625140]  ;;  %v81_v53 = vld [vmem:[%s809_s1 + $0x218] sm:$0xff]  ;;  %v80_v58 = vld [vmem:[%s809_s1 + $0x210] sm:$0xff] }
  0x29   :  { %250 = vmatpush.msrb.mxu0 %v90_v12  ;;  %269 = vmatpush.msrb.mxu1 %v107_v13  ;;  %v98_v54 = vld [vmem:[%s809_s1 + $0x2a0] sm:$0xff]  ;;  %v129_v56 = vld [vmem:[%s809_s1 + $0x398] sm:$0xff]  ;;  %v152_v57 = vld.sshfl [vmem:[#allocation1 + $0x8] sm:$0xff pattern:$0x73625140] }
  0x2a   :  { %291 = vmatpush.msrb.mxu2 %v121_v15  ;;  %310 = vmatpush.msrb.mxu3 %v138_v16  ;;  %v97_v59 = vld [vmem:[%s809_s1 + $0x298] sm:$0xff]  ;;  %v111_v60 = vld [vmem:[%s809_s1 + $0x308] sm:$0xff]  ;;  %v128_v61 = vld [vmem:[%s809_s1 + $0x390] sm:$0xff] }
  0x2b   :  { %251 = vmatpush.msrb.mxu0 %v89_v17  ;;  %270 = vmatpush.msrb.mxu1 %v106_v18  ;;  %v79_v62 = vld [vmem:[%s809_s1 + $0x208] sm:$0xff]  ;;  %v96_v63 = vld [vmem:[%s809_s1 + $0x290] sm:$0xff]  ;;  %v110_v0 = vld [vmem:[%s809_s1 + $0x300] sm:$0xff] }
  0x2c   :  { %292 = vmatpush.msrb.mxu2 %v120_v19  ;;  %311 = vmatpush.msrb.mxu3 %v137_v20  ;;  %v127_v1 = vld [vmem:[%s809_s1 + $0x388] sm:$0xff]  ;;  %v157_v2 = vld.sshfl [vmem:[#allocation1 + $0x30] sm:$0xff pattern:$0x73625140]  ;;  %v78_v3 = vld [vmem:[%s809_s1 + $0x200] sm:$0xff] }
  0x2d   :  { %252 = vmatpush.msrb.mxu0 %v88_v21  ;;  %271 = vmatpush.msrb.mxu1 %v105_v22  ;;  %v95_v4 = vld [vmem:[%s809_s1 + $0x288] sm:$0xff]  ;;  %v126_v5 = vld [vmem:[%s809_s1 + $0x380] sm:$0xff]  ;;  %v158_v7 = vld.sshfl [vmem:[#allocation1 + $0x38] sm:$0xff pattern:$0x73625140] }
  0x2e   :  { %293 = vmatpush.msrb.mxu2 %v119_v23  ;;  %312 = vmatpush.msrb.mxu3 %v136_v24  ;;  %v155_v6 = vld.sshfl [vmem:[#allocation1 + $0x20] sm:$0xff pattern:$0x73625140]  ;;  %v156_v9 = vld.sshfl [vmem:[#allocation1 + $0x28] sm:$0xff pattern:$0x73625140] }
  0x2f   :  { %253 = vmatpush.msrb.mxu0 %v87_v26  ;;  %272 = vmatpush.msrb.mxu1 %v104_v27  ;;  %v94_v8 = vld [vmem:[%s809_s1 + $0x280] sm:$0xff] }
  0x30   :  { %294 = vmatpush.msrb.mxu2 %v118_v28  ;;  %313 = vmatpush.msrb.mxu3 %v135_v29  ;;  %v378_v10 = vld [vmem:[%s809_s1 + $0x400] ss:$0 sm:$0xff]  ;;  %v347_v29 = vld [vmem:[%s811_s2 + $0x18] sm:$0xff] }
  0x31   :  { %254 = vmatpush.msrb.mxu0 %v86_v30  ;;  %273 = vmatpush.msrb.mxu1 %v103_v31  ;;  %v346_v30 = vld [vmem:[%s811_s2 + $0x10] sm:$0xff]  ;;  %v345_v31 = vld [vmem:[%s811_s2 + $0x8] sm:$0xff] }
  0x32   :  { %295 = vmatpush.msrb.mxu2 %v117_v32  ;;  %314 = vmatpush.msrb.mxu3 %v134_v33  ;;  %v344_v32 = vld [vmem:[%s811_s2] sm:$0xff] }
  0x33   :  { %255 = vmatpush.msrb.mxu0 %v85_v34  ;;  %274 = vmatpush.msrb.mxu1 %v102_v35 }
  0x34   :  { %296 = vmatpush.msrb.mxu2 %v116_v36  ;;  %315 = vmatpush.msrb.mxu3 %v133_v37 }
  0x35   :  { %256 = vmatpush.msrb.mxu0 %v84_v38  ;;  %275 = vmatpush.msrb.mxu1 %v101_v39 }
  0x36   :  { %297 = vmatpush.msrb.mxu2 %v115_v40  ;;  %316 = vmatpush.msrb.mxu3 %v132_v41 }
  0x37   :  { %257 = vmatpush.msrb.mxu0 %v83_v42  ;;  %276 = vmatpush.msrb.mxu1 %v100_v43 }
  0x38   :  { %298 = vmatpush.msrb.mxu2 %v114_v44  ;;  %317 = vmatpush.msrb.mxu3 %v131_v45 }
  0x39   :  { %223 = vmatmul.f32.vlgmr.msra.gmra.mxu2 %v153_v46  ;;  %258 = vmatpush.msrb.mxu0 %v82_v47 }
  0x3a   :  { %277 = vmatpush.msrb.mxu1 %v99_v48  ;;  %299 = vmatpush.msrb.mxu2 %v113_v49 }
  0x3b   :  { %318 = vmatpush.msrb.mxu3 %v130_v50  ;;  %183 = vmatmul.f32.vlgmr.msra.gmra.mxu0 %v151_v51 }
  0x3c   :  { %243 = vmatmul.f32.vlgmr.msra.gmra.mxu3 %v154_v52  ;;  %259 = vmatpush.msrb.mxu0 %v81_v53 }
  0x3d   :  { %278 = vmatpush.msrb.mxu1 %v98_v54  ;;  %300 = vmatpush.msrb.mxu2 %v112_v55 }
  0x3e   :  { %319 = vmatpush.msrb.mxu3 %v129_v56  ;;  %203 = vmatmul.f32.vlgmr.msra.gmra.mxu1 %v152_v57 }
  0x3f   :  { %260 = vmatpush.msrb.mxu0 %v80_v58  ;;  %279 = vmatpush.msrb.mxu1 %v97_v59 }
  0x40   :  { %301 = vmatpush.msrb.mxu2 %v111_v60  ;;  %320 = vmatpush.msrb.mxu3 %v128_v61 }
  0x41   :  { %261 = vmatpush.msrb.mxu0 %v79_v62  ;;  %280 = vmatpush.msrb.mxu1 %v96_v63 }
  0x42   :  { %302 = vmatpush.msrb.mxu2 %v110_v0  ;;  %321 = vmatpush.msrb.mxu3 %v127_v1 }
  0x43   :  { %303 = vmatmul.f32.vlgmr.msrb.gmra.mxu2 %v157_v2  ;;  %262 = vmatpush.msrb.mxu0 %v78_v3 }
  0x44   :  { %281 = vmatpush.msrb.mxu1 %v95_v4  ;;  %322 = vmatpush.msrb.mxu3 %v126_v5 }
  0x45   :  { %263 = vmatmul.f32.vlgmr.msrb.gmra.mxu0 %v155_v6  ;;  %323 = vmatmul.f32.vlgmr.msrb.gmra.mxu3 %v158_v7 }
  0x46   :  { %282 = vmatpush.msrb.mxu1 %v94_v8  ;;  %364 = vmatpush.msra.mxu0 %v347_v29 }
  0x47   :  { %283 = vmatmul.f32.vlgmr.msrb.gmra.mxu1 %v156_v9 }
  0x48   :  { %365 = vmatpush.msra.mxu0 %v346_v30 }
  0x4a   :  { %366 = vmatpush.msra.mxu0 %v345_v31 }
  0x4c   :  { %367 = vmatpush.msra.mxu0 %v344_v32 }
  0xb8   :  { %v184_v11 = vpop.f32.mrf.mxu0 }
  0xb9   :  { %v185_v12 = vadd.f32 %v378_v10, %v184_v11 }
  0xbb   :  { %v204_v13 = vpop.f32.mrf.mxu1 }
  0xbc   :  { %v205_v14 = vadd.f32 %v204_v13, %v185_v12  ;;  %v224_v15 = vpop.f32.mrf.mxu2 }
  0xbe   :  { %v225_v16 = vadd.f32 %v224_v15, %v205_v14 }
  0xbf   :  { %v244_v17 = vpop.f32.mrf.mxu3 }
  0xc0   :  { %v245_v18 = vadd.f32 %v244_v17, %v225_v16 }
  0xc2   :  { %v264_v19 = vpop.f32.mrf.mxu0 }
  0xc3   :  { %v265_v20 = vadd.f32 %v264_v19, %v245_v18 }
  0xc4   :  { %v284_v21 = vpop.f32.mrf.mxu1 }
  0xc5   :  { %v285_v22 = vadd.f32 %v284_v21, %v265_v20 }
  0xc6   :  { %v304_v23 = vpop.f32.mrf.mxu2 }
  0xc7   :  { %v305_v24 = vadd.f32 %v304_v23, %v285_v22 }
  0xc8   :  { %v324_v25 = vpop.f32.mrf.mxu3 }
  0xc9   :  { %v325_v26 = vadd.f32 %v324_v25, %v305_v24 }
  0xcb   :  { %v327_v27 = vmul.f32 %v325_v26, %v325_v26 }
  0xcd   :  { %v329_v28 = vsel %vm328_vm0, %v327_v27, 0.0 }
  0xce   :  { %330 = vadd.xlane.f32.xlu0 %v329_v28 }
 0x141   :  { %v331_v33 = vpop.xlane.xlu0 %330 }
 0x142   :  { %v332_v34 = vadd.f32 1e-12, %v331_v33 }
 0x144   :  { %379 = vrsqrt.f32 %v332_v34  ;;  %vm339_vm2 = vweird.f32 %v332_v34 }
 0x14a   :  { %v380_v35 = vpop.eup %379 }
 0x14b   :  { %v334_v36 = vmul.f32 %v380_v35, %v332_v34  ;;  %vm340_vm1 = vweird.f32 %v380_v35 }
 0x14c   :  { %vm341_vm3 = vmor %vm339_vm2, %vm340_vm1 }
 0x14d   :  { %v335_v37 = vmul.f32 %v380_v35, %v334_v36 }
 0x14f   :  { %v336_v38 = vmul.f32 0.5, %v335_v37 }
 0x151   :  { %v337_v39 = vsub.f32 1.5, %v336_v38 }
 0x153   :  { %v338_v40 = vmul.f32 %v380_v35, %v337_v39 }
 0x155   :  { %v342_v41 = vsel %vm341_vm3, %v380_v35, %v338_v40 }
 0x156   :  { %v343_v42 = vmul.f32 %v342_v41, %v325_v26 }
 0x158   :  { %377 = vmatmul.msk.f32.vlgmr.msra.gmra.mxu0 %vm348_vm4, %v343_v42 }
 0x1d5   :  { %v369_v43 = vpop.f32.mrf.mxu0 }
 0x1d6   :  { %372 = vst [vmem:[%s812_s3] sm:$0x3] %v369_v43 }

</bundles_post_ra>
